<compile_context>
chip_gen: v7x
topology: tpu7x:2x2x1
jax: 0.10.0
libtpu: 0.0.40
codegen_flags: <defaults>
</compile_context>

<pallas_src>
import functools

import jax
import jax.numpy as jnp
from jax import lax
from jax.experimental import pallas as pl
from jax.experimental.pallas import tpu as pltpu

_LANE = 128
_SUBLANE = 8
_FALLBACK_VMEM_CAP = 64 << 20     # conservative per-TC physical VMEM (v7x)


def _round_up(n, m):
    return ((n + m - 1) // m) * m


def _physical_vmem_bytes():
    """Per-TensorCore VMEM capacity; conservative fallback if unqueryable."""
    try:
        cap = int(pltpu.get_tpu_info().vmem_capacity_bytes)
        if cap > 0:
            return cap
    except Exception:
        pass
    return _FALLBACK_VMEM_CAP


def _pick_divisor(n, fits, steps_of, block_bytes_of, target_steps,
                  min_block_bytes=1 << 20):
    """Pick a divisor d of n. Hard constraint: fits(d) (VMEM budget).
    Preference order: >= target_steps grid steps (pipeline steady state),
    block >= ~1 MiB, even step count (v7x megacore balance); within equal
    preference, the largest block (fewest per-step overheads)."""
    feasible = [d for d in range(1, n + 1) if n % d == 0 and fits(d)]
    if not feasible:
        return None

    def score(d):
        steps = steps_of(d)
        s = 0
        if steps >= target_steps:
            s += 4
        if block_bytes_of(d) >= min_block_bytes:
            s += 2
        if steps == 1 or steps % 2 == 0:
            s += 1
        return (s, block_bytes_of(d))

    return max(feasible, key=score)


def _excite(pooled_f32, w1_ref, w2_ref):
    """FC1 -> ELU -> FC2 -> sigmoid on a (Bt, C) f32 pooled tensor."""
    w1 = w1_ref[...].astype(jnp.float32)                       # (C, Cr)
    w2 = w2_ref[...].astype(jnp.float32)                       # (Cr, C)
    h = jnp.dot(pooled_f32, w1, preferred_element_type=jnp.float32)
    # ELU(alpha=1).  exp(h)-1 is used instead of expm1 because Mosaic lowering
    # of expm1 is not guaranteed; in f32 the absolute deviation from PyTorch's
    # expm1-based ELU is < 1e-7 over the range where they differ.
    h = jnp.where(h > 0, h, jnp.exp(h) - 1.0)
    s = jnp.dot(h, w2, preferred_element_type=jnp.float32)
    return jax.nn.sigmoid(s)                                   # (Bt, C) f32


# ---------------------------------------------------------------------------
# Fused single-pass kernel: one (Bt, ., .) slab of x resident in VMEM.
# ---------------------------------------------------------------------------
def _se_fused_kernel(x_ref, w1_ref, w2_ref, o_ref, *, spatial_axis, inv_hw):
    x = x_ref[...]                                             # native dtype
    # f32-accumulated global average pool; the astype feeds the reduce.
    pooled = jnp.sum(x.astype(jnp.float32), axis=spatial_axis) * inv_hw  # (Bt,C)
    scale = _excite(pooled, w1_ref, w2_ref).astype(x.dtype)    # (Bt, C)
    # Channel-wise rescale in x's native dtype (bf16 VALU on v6e/v7x).
    o_ref[...] = x * jnp.expand_dims(scale, spatial_axis)


# ---------------------------------------------------------------------------
# Two-pass fallback for slabs that do not fit VMEM: pool+excite, then scale.
# ---------------------------------------------------------------------------
def _se_pool_kernel(x_ref, w1_ref, w2_ref, s_ref, acc_ref, *,
                    spatial_axis, inv_hw, rem, need_mask):
    h = pl.program_id(1)
    last = pl.num_programs(1) - 1

    @pl.when(h == 0)
    def _init():
        acc_ref[...] = jnp.zeros_like(acc_ref)

    def _accumulate(mask_tail):
        x = x_ref[...].astype(jnp.float32)
        if mask_tail:
            # Only the ragged LAST spatial tile pays iota/compare/select.
            pos = lax.broadcasted_iota(jnp.int32, x.shape, spatial_axis)
            x = jnp.where(pos < rem, x, 0.0)
        acc_ref[...] += jnp.sum(x, axis=spatial_axis)          # (Bt, C)

    if need_mask:
        @pl.when(h != last)
        def _full_tile():
            _accumulate(False)

        @pl.when(h == last)
        def _tail_tile():
            _accumulate(True)
    else:
        _accumulate(False)

    @pl.when(h == last)
    def _finalize():
        s = _excite(acc_ref[...] * inv_hw, w1_ref, w2_ref)     # (Bt, C) f32
        s_ref[...] = jnp.expand_dims(s, spatial_axis)


def _se_scale_kernel(s_ref, x_ref, o_ref):
    x = x_ref[...]
    o_ref[...] = x * s_ref[...].astype(x.dtype)                # broadcast over HW


# ---------------------------------------------------------------------------
# Wrapper
# ---------------------------------------------------------------------------
def se_layer(x, w1_t, w2_t, *, data_format="NCHW",
             vmem_budget_bytes=None, donate_x=False):
    """Squeeze-and-excitation forward.

    x     : (B, C, H, W) for "NCHW" (PyTorch layout) or (B, H, W, C) for "NHWC".
    w1_t  : (C, C//r)  first Linear weight, pre-transposed for y @ W.
    w2_t  : (C//r, C)  second Linear weight, pre-transposed.
    """
    if data_format == "NCHW":
        B, C, H, W = x.shape
        spatial_axis = 2
        x3 = x.reshape(B, C, H * W)            # HW on the lane axis (free reshape)
    elif data_format == "NHWC":
        B, H, W, C = x.shape
        spatial_axis = 1
        x3 = x.reshape(B, H * W, C)            # C on the lane axis (free reshape)
    else:
        raise ValueError(f"unknown data_format {data_format!r}")

    HW = H * W
    Cr = w1_t.shape[1]
    assert w1_t.shape == (C, Cr) and w2_t.shape == (Cr, C)

    dtype_bytes = jnp.dtype(x.dtype).itemsize
    needs_f32_temp = jnp.dtype(x.dtype) != jnp.dtype(jnp.float32)
    w_itemsize = jnp.dtype(w1_t.dtype).itemsize
    # Weight footprint, (8,128)-padded.  The index_map is constant so the
    # pipeline only fetches them once; keep the default 2x buffer factor in
    # the accounting (conservative).
    w_bytes = 2 * (_round_up(C, _SUBLANE) * _round_up(Cr, _LANE)
                   + _round_up(Cr, _SUBLANE) * _round_up(C, _LANE)) * w_itemsize

    phys_vmem = _physical_vmem_bytes()
    # Generation-aware budget (~96 MiB on 128-MiB v5e/v6e, ~48 MiB on 64-MiB
    # v7x).  A caller-supplied budget is also clamped to physical VMEM.
    if vmem_budget_bytes:
        budget = int(vmem_budget_bytes)
    else:
        budget = (phys_vmem * 3) // 4
    budget = min(budget, phys_vmem - (8 << 20))

    if spatial_axis == 2:                       # (Bt, C, HW)
        slab_elems = _round_up(C, _SUBLANE) * _round_up(HW, _LANE)
    else:                                       # (Bt, HW, C)
        slab_elems = _round_up(HW, _SUBLANE) * _round_up(C, _LANE)

    def fused_bytes(bt):
        # double-buffered input + double-buffered output + pinned weights
        b = 4 * bt * slab_elems * dtype_bytes + w_bytes
        if needs_f32_temp:
            # possible f32 materialization of the pooled upcast (bf16 inputs)
            b += bt * slab_elems * 4
        return b

    def fused_block_bytes(bt):
        return bt * slab_elems * dtype_bytes

    def _vmem_limit(footprint):
        want = int(footprint * 1.25) + (2 << 20)
        # clamp to physical VMEM minus headroom (prevents v7x over-request)
        return int(min(max(want, 16 << 20), phys_vmem - (4 << 20)))

    trans = B * (C + Cr)                        # ELU exp + sigmoid
    fc_flops = 4 * B * C * Cr                   # the two tiny FC layers

    bt = _pick_divisor(
        B,
        fits=lambda d: fused_bytes(d) <= budget,
        steps_of=lambda d: B // d,
        block_bytes_of=fused_block_bytes,
        target_steps=min(8, B))

    if bt is not None:
        # ---------------- fused single-pass path -----------------------------
        blk = (bt, C, HW) if spatial_axis == 2 else (bt, HW, C)
        vmem_limit = _vmem_limit(fused_bytes(bt))
        cost = pl.CostEstimate(
            flops=fc_flops + B * C * HW,
            transcendentals=trans,
            bytes_accessed=2 * B * C * HW * dtype_bytes + w_bytes // 2)
        kernel = functools.partial(_se_fused_kernel,
                                   spatial_axis=spatial_axis, inv_hw=1.0 / HW)
        out3 = pl.pallas_call(
            kernel,
            out_shape=jax.ShapeDtypeStruct(x3.shape, x.dtype),
            grid_spec=pltpu.PrefetchScalarGridSpec(
                num_scalar_prefetch=0,
                grid=(B // bt,),
                in_specs=[
                    pl.BlockSpec(blk, lambda b: (b, 0, 0)),
                    pl.BlockSpec((C, Cr), lambda b: (0, 0)),
                    pl.BlockSpec((Cr, C), lambda b: (0, 0)),
                ],
                out_specs=pl.BlockSpec(blk, lambda b: (b, 0, 0)),
            ),
            compiler_params=pltpu.CompilerParams(
                dimension_semantics=("parallel",),
                vmem_limit_bytes=vmem_limit),
            cost_estimate=cost,
            input_output_aliases=({0: 0} if donate_x else {}),
        )(x3, w1_t, w2_t)
    else:
        # ---------------- two-pass spatially tiled fallback ------------------
        align = _LANE if spatial_axis == 2 else _SUBLANE
        hw_pad = _round_up(HW, align)

        def tile_bytes(bt_f, hw_tile):
            if spatial_axis == 2:
                elems = bt_f * _round_up(C, _SUBLANE) * hw_tile
            else:
                elems = bt_f * _round_up(hw_tile, _SUBLANE) * _round_up(C, _LANE)
            b = 4 * elems * dtype_bytes + w_bytes
            if needs_f32_temp:
                b += elems * 4
            return b

        # Largest aligned spatial tile that fits the budget (at bt=1).
        chunk_cost = max(tile_bytes(1, align) - w_bytes, 1)
        avail = max(budget - w_bytes, 0)
        n_chunks = max(1, min(hw_pad // align, avail // chunk_cost))
        hw_t = n_chunks * align
        n_hw = pl.cdiv(HW, hw_t)
        need_mask = (HW % hw_t) != 0
        rem = HW - (n_hw - 1) * hw_t            # valid extent of the last tile

        bt_f = _pick_divisor(
            B,
            fits=lambda d: tile_bytes(d, hw_t) <= budget,
            steps_of=lambda d: (B // d) * n_hw,
            block_bytes_of=lambda d: tile_bytes(d, hw_t) - w_bytes,
            target_steps=min(8, B * n_hw)) or 1

        vmem_limit = _vmem_limit(tile_bytes(bt_f, hw_t))

        if spatial_axis == 2:
            x_blk, x_idx = (bt_f, C, hw_t), (lambda b, h: (b, 0, h))
            s_shape, s_blk = (B, C, 1), (bt_f, C, 1)
        else:
            x_blk, x_idx = (bt_f, hw_t, C), (lambda b, h: (b, h, 0))
            s_shape, s_blk = (B, 1, C), (bt_f, 1, C)

        pool_kernel = functools.partial(
            _se_pool_kernel, spatial_axis=spatial_axis, inv_hw=1.0 / HW,
            rem=rem, need_mask=need_mask)
        s = pl.pallas_call(
            pool_kernel,
            out_shape=jax.ShapeDtypeStruct(s_shape, jnp.float32),
            grid_spec=pltpu.PrefetchScalarGridSpec(
                num_scalar_prefetch=0,
                grid=(B // bt_f, n_hw),                 # reduction axis last
                in_specs=[
                    pl.BlockSpec(x_blk, x_idx),
                    pl.BlockSpec((C, Cr), lambda b, h: (0, 0)),
                    pl.BlockSpec((Cr, C), lambda b, h: (0, 0)),
                ],
                out_specs=pl.BlockSpec(s_blk, lambda b, h: (b, 0, 0)),
                scratch_shapes=[pltpu.VMEM((bt_f, C), jnp.float32)],
            ),
            compiler_params=pltpu.CompilerParams(
                dimension_semantics=("parallel", "arbitrary"),
                vmem_limit_bytes=vmem_limit),
            cost_estimate=pl.CostEstimate(
                flops=fc_flops + B * C * HW,
                transcendentals=trans,
                bytes_accessed=B * C * HW * dtype_bytes + w_bytes // 2),
        )(x3, w1_t, w2_t)

        out3 = pl.pallas_call(
            _se_scale_kernel,
            out_shape=jax.ShapeDtypeStruct(x3.shape, x.dtype),
            grid_spec=pltpu.PrefetchScalarGridSpec(
                num_scalar_prefetch=0,
                grid=(B // bt_f, n_hw),
                in_specs=[
                    pl.BlockSpec(s_blk, lambda b, h: (b, 0, 0)),
                    pl.BlockSpec(x_blk, x_idx),
                ],
                out_specs=pl.BlockSpec(x_blk, x_idx),
            ),
            compiler_params=pltpu.CompilerParams(
                dimension_semantics=("parallel", "parallel"),
                vmem_limit_bytes=vmem_limit),
            cost_estimate=pl.CostEstimate(
                flops=B * C * HW, transcendentals=0,
                bytes_accessed=2 * B * C * HW * dtype_bytes),
            input_output_aliases=({1: 0} if donate_x else {}),
        )(s, x3)

    if data_format == "NCHW":
        return out3.reshape(B, C, H, W)
    return out3.reshape(B, H, W, C)


def _reference(x, w1_t, w2_t):
    # Pure-JAX reference of the PyTorch forward (NCHW).
    y = jnp.mean(x, axis=(2, 3))                 # (B, C)
    h = y @ w1_t
    h = jnp.where(h > 0, h, jnp.exp(h) - 1.0)    # ELU
    s = jax.nn.sigmoid(h @ w2_t)                 # (B, C)
    return x * s[:, :, None, None]


if __name__ == "__main__":
    B, C, H, W = 2, 4, 16, 16
    reduction = 2
    Cr = C // reduction

    key = jax.random.PRNGKey(0)
    kx, k1, k2 = jax.random.split(key, 3)

    x = jax.random.normal(kx, (B, C, H, W), dtype=jnp.float32)

    # nn.Linear weights are (out, in); transpose once for the y @ W convention.
    w1 = jax.random.normal(k1, (Cr, C), dtype=jnp.float32) * (1.0 / jnp.sqrt(C))
    w2 = jax.random.normal(k2, (C, Cr), dtype=jnp.float32) * (1.0 / jnp.sqrt(Cr))
    w1_t, w2_t = w1.T, w2.T

    ref = _reference(x, w1_t, w2_t)

    # 1) Fused single-pass path (NCHW, HW = 256 -> already lane-dense).
    out = jax.block_until_ready(se_layer(x, w1_t, w2_t))
    assert out.shape == (B, C, H, W)
    assert jnp.allclose(out, ref, atol=1e-5, rtol=1e-5), "fused NCHW mismatch"

    # 2) Channels-last presentation (what an NHWC network would pass directly).
    x_nhwc = jnp.transpose(x, (0, 2, 3, 1))
    out_nhwc = jax.block_until_ready(
        se_layer(x_nhwc, w1_t, w2_t, data_format="NHWC"))
    assert jnp.allclose(out_nhwc, jnp.transpose(ref, (0, 2, 3, 1)),
                        atol=1e-5, rtol=1e-5), "fused NHWC mismatch"

    # 3) Two-pass spatially tiled fallback, forced via a tiny VMEM budget
    #    (HW = 1024 split into lane-aligned 128-wide tiles).
    x_big = jax.random.normal(kx, (B, C, 32, 32), dtype=jnp.float32)
    ref_big = _reference(x_big, w1_t, w2_t)
    out_big = jax.block_until_ready(
        se_layer(x_big, w1_t, w2_t, vmem_budget_bytes=32 * 1024))
    assert jnp.allclose(out_big, ref_big, atol=1e-5, rtol=1e-5), "tiled mismatch"

    # 4) Fallback with a ragged spatial tile (HW = 196, hw_t = 128 -> masked
    #    sum applied to the last tile only).
    x_rag = jax.random.normal(kx, (B, C, 14, 14), dtype=jnp.float32)
    ref_rag = _reference(x_rag, w1_t, w2_t)
    out_rag = jax.block_until_ready(
        se_layer(x_rag, w1_t, w2_t, vmem_budget_bytes=16 * 1024))
    assert jnp.allclose(out_rag, ref_rag, atol=1e-5, rtol=1e-5), "masked tile mismatch"

    print("KERNEL_OK")
</pallas_src>

<mosaic_0001>
module attributes {stable_mosaic.version = 11 : i64} {
  func.func @_se_fused_kernel(%arg0: i32, %arg1: memref<1x4x256xf32, #tpu.memory_space<vmem>>, %arg2: memref<4x2xf32, #tpu.memory_space<vmem>>, %arg3: memref<2x4xf32, #tpu.memory_space<vmem>>, %arg4: memref<1x4x256xf32, #tpu.memory_space<vmem>>) attributes {dimension_semantics = [#tpu.dimension_semantics<parallel>], iteration_bounds = array<i64: 2>, scalar_prefetch = 0 : i64, scratch_operands = 0 : i64, tpu.core_type = #tpu.core_type<tc>, window_params = [{transform_indices = @transform_0, window_bounds = array<i64: 1, 4, 256>}, {pipeline_mode = #tpu.pipeline_mode<synchronous>, transform_indices = @transform_1, window_bounds = array<i64: 4, 2>}, {pipeline_mode = #tpu.pipeline_mode<synchronous>, transform_indices = @transform_2, window_bounds = array<i64: 2, 4>}, {transform_indices = @transform_3, window_bounds = array<i64: 1, 4, 256>}]} {
    %c0 = arith.constant 0 : index
    %c0_0 = arith.constant 0 : index
    %c0_1 = arith.constant 0 : index
    %0 = vector.load %arg1[%c0, %c0_0, %c0_1] : memref<1x4x256xf32, #tpu.memory_space<vmem>>, vector<1x4x256xf32>
    %cst = arith.constant dense<0.000000e+00> : vector<1x4xf32>
    %1 = vector.multi_reduction <add>, %0, %cst [2] : vector<1x4x256xf32> to vector<1x4xf32>
    %cst_2 = arith.constant 3.906250e-03 : f32
    %2 = vector.broadcast %cst_2 : f32 to vector<1x4xf32>
    %3 = arith.mulf %1, %2 : vector<1x4xf32>
    %c0_3 = arith.constant 0 : index
    %c0_4 = arith.constant 0 : index
    %4 = vector.load %arg2[%c0_3, %c0_4] : memref<4x2xf32, #tpu.memory_space<vmem>>, vector<4x2xf32>
    %c0_5 = arith.constant 0 : index
    %c0_6 = arith.constant 0 : index
    %5 = vector.load %arg3[%c0_5, %c0_6] : memref<2x4xf32, #tpu.memory_space<vmem>>, vector<2x4xf32>
    %cst_7 = arith.constant dense<0.000000e+00> : vector<1x2xf32>
    %6 = tpu.matmul %3, %4, %cst_7 {dimension_numbers = #tpu.dot_dimension_numbers<[1], [0], [0], [1], [0, 0, 1, 1], [], []>} : vector<1x4xf32>, vector<4x2xf32>, vector<1x2xf32> -> vector<1x2xf32>
    %cst_8 = arith.constant 0.000000e+00 : f32
    %7 = vector.broadcast %cst_8 : f32 to vector<1x2xf32>
    %8 = arith.cmpf ogt, %6, %7 : vector<1x2xf32>
    %9 = math.exp %6 : vector<1x2xf32>
    %cst_9 = arith.constant 1.000000e+00 : f32
    %10 = vector.broadcast %cst_9 : f32 to vector<1x2xf32>
    %11 = arith.subf %9, %10 : vector<1x2xf32>
    %12 = arith.select %8, %6, %11 : vector<1x2xi1>, vector<1x2xf32>
    %cst_10 = arith.constant dense<0.000000e+00> : vector<1x4xf32>
    %13 = tpu.matmul %12, %5, %cst_10 {dimension_numbers = #tpu.dot_dimension_numbers<[1], [0], [0], [1], [0, 0, 1, 1], [], []>} : vector<1x2xf32>, vector<2x4xf32>, vector<1x4xf32> -> vector<1x4xf32>
    %14 = arith.negf %13 : vector<1x4xf32>
    %15 = math.exp %14 : vector<1x4xf32>
    %cst_11 = arith.constant 1.000000e+00 : f32
    %16 = vector.broadcast %cst_11 : f32 to vector<1x4xf32>
    %17 = arith.addf %16, %15 : vector<1x4xf32>
    %18 = arith.divf %16, %17 : vector<1x4xf32>
    %19 = vector.shape_cast %18 : vector<1x4xf32> to vector<1x4x1xf32>
    %20 = vector.broadcast %19 : vector<1x4x1xf32> to vector<1x4x256xf32>
    %21 = arith.mulf %0, %20 : vector<1x4x256xf32>
    %c0_12 = arith.constant 0 : index
    %c0_13 = arith.constant 0 : index
    %c0_14 = arith.constant 0 : index
    %22 = vector.load %arg4[%c0_12, %c0_13, %c0_14] : memref<1x4x256xf32, #tpu.memory_space<vmem>>, vector<1x4x256xf32>
    tpu.vector_store %arg4[%c0_12, %c0_13, %c0_14], %21 {strides = array<i32>} : memref<1x4x256xf32, #tpu.memory_space<vmem>>, vector<1x4x256xf32>,
    return
  }
  func.func @transform_0(%arg0: i32) -> (i32, i32, i32) {
    %c0_i32 = arith.constant 0 : i32
    %c0_i32_0 = arith.constant 0 : i32
    %c0_i32_1 = arith.constant 0 : i32
    return %arg0, %c0_i32, %c0_i32_0 : i32, i32, i32
  }
  func.func @transform_1(%arg0: i32) -> (i32, i32) {
    %c0_i32 = arith.constant 0 : i32
    %c0_i32_0 = arith.constant 0 : i32
    %c0_i32_1 = arith.constant 0 : i32
    return %c0_i32, %c0_i32_0 : i32, i32
  }
  func.func @transform_2(%arg0: i32) -> (i32, i32) {
    %c0_i32 = arith.constant 0 : i32
    %c0_i32_0 = arith.constant 0 : i32
    %c0_i32_1 = arith.constant 0 : i32
    return %c0_i32, %c0_i32_0 : i32, i32
  }
  func.func @transform_3(%arg0: i32) -> (i32, i32, i32) {
    %c0_i32 = arith.constant 0 : i32
    %c0_i32_0 = arith.constant 0 : i32
    %c0_i32_1 = arith.constant 0 : i32
    return %arg0, %c0_i32, %c0_i32_0 : i32, i32, i32
  }
}

</mosaic_0001>

<bundles_post_ra>
// kernel: tpu_custom_call.1
= control target key start
LH: loop header
LB: loop body
LE: loop exit
PB: predicated region body
PF: predicated region fallthrough
CT: control target
= control target key end

     0   :  { %8 = vsyncpa [#allocation3], 0  ;;  %s861_s0 = inlined_call_operand.hbm [shape: f32[2,4,256], index: 0, kind: input, shape index: {}]   ;;  %s862_s1 = inlined_call_operand.vmem [shape: f32[4,2], index: 1, kind: input, shape index: {}]   ;;  %s863_s2 = inlined_call_operand.vmem [shape: f32[2,4], index: 2, kind: input, shape index: {}]   ;;  %s864_s3 = inlined_call_operand.hbm [shape: f32[2,4,256], index: 3, kind: output, shape index: {}]  }
   0x1   :  { %10 = vsyncpa [#allocation3 + $0x1], 0 }
   0x2   :  { %11 = vsyncpa [#allocation4], 0 }
   0x3   :  { %13 = vsyncpa [#allocation4 + $0x1], 0  ;;  %s690_s12 = smov 0   ;;  %s692_s13 = smov 0  }
   0x4   :  { %s694_s14 = smov 0   ;;  %s696_s15 = smov 0  }
   0x5 LB: > { %s711_s16 = sadd.s32 4294967295, %s663_s15   ;;  %s475_s17 = sadd.s32 4294967294, %s663_s15   ;;  %s663_s15 = sphi %s696_s15, %s879_s15   ;;  %s659_s14 = sphi %s694_s14, %s878_s14   ;;  %s655_s13 = sphi %s692_s13, %s877_s13   ;;  %s651_s12 = sphi %s690_s12, %s876_s12  }
   0x6   : > { %s715_s18 = sadd.s32 1, %s663_s15   ;;  %s26_s19 = sadd.s32 1, %s659_s14 }
   0x7   : > { %s23_s20 = ssub.s32 %s663_s15, %s715_s18  ;;  %p33_p0 = scmp.ne.s32.totalorder %s659_s14, %s655_s13 }
   0x8   : > { %p24_p1 = scmp.eq.s32.totalorder %s23_s20, 0  ;;  %p34_p2 = scmp.eq.s32.totalorder %s663_s15, 0 }
   0x9   : > { %p39_p3 = scmp.ne.s32.totalorder %s655_s13, %s651_s12  ;;  %p40_p4 = scmp.eq.s32.totalorder %s711_s16, 0 }
   0xa   : > { %s727_s21 = scalar_select %p24_p1, %s659_s14, %s26_s19  }
   0xb   : > { %p729_p5 = por %p34_p2, %p33_p0  ;;  %p733_p6 = por %p40_p4, %p39_p3 }
   0xc   : > { %p105_p7 = scmp.eq.s32.totalorder %s711_s16, 1  ;;  %p111_p8 = scmp.eq.s32.totalorder %s475_s17, 1 }
   0xd   : > { %p523_p10 = scmp.lt.s32.totalorder %s663_s15, 2  ;;  %s137_s26 = sand.u32 1, %s659_s14  }
   0xe   : > { %p740_p11 = por %p105_p7, %p33_p0  ;;  %p744_p12 = por %p111_p8, %p39_p3 }
   0xf   : > { %s495_s27 = sshll.u32 %s663_s15, 7  ;;  %s478_s28 = sshll.u32 %s137_s26, 3 }
  0x10   : > { %s868_s24 = scalar_select %p740_p11, 1, 0 }
  0x11   : > { %s869_s25 = scalar_select %p744_p12, 1, 0 }
  0x12   : > { %s753_s4 = scalar_lea.hbm %s861_s0, %s495_s27  ;;  %s141_s5 = scalar_lea.vmem [#allocation2], %s478_s28 }
  0x13   : > { %s149_s6 = sshll.u32 %s141_s5, 4  ;;  %p757_p13 = pnand %p523_p10, %p729_p5  ;;  %s761_s6 = int_to_ptr.vmem [resolvable:$true] %s149_s6 }
  0x14   : > { %s138_s8 = scalar_lea.sflag [#allocation3], %s137_s26  ;;  %s567_s9 = scalar_lea.hbm %s753_s4, 128 }
  0x15   : > { %p568_p2 = scmp.ne.s32.totalorder %s753_s4, %s567_s9  ;;  %p569_p3 = pneg %p757_p13 }
  0x16   : > { %s572_s17 = scalar_lea.hbm %s861_s0, 256  ;;  %p573_p5 = scmp.lt.u32.totalorder %s753_s4, %s861_s0 }
  0x17   : > { %p570_p4 = pnand %p569_p3, %p568_p2  ;;  %p574_p8 = scmp.lt.u32.totalorder %s572_s17, %s567_s9 }
  0x18   : > { %p576_p9 = scmp.lt.u32.totalorder %s567_s9, %s753_s4 }
  0x19   : > { %p571_p7 = pneg %p570_p4  ;;  %p575_p10 = por %p574_p8, %p573_p5 }
  0x1b   : > { %p577_p0 = por %p576_p9, %p575_p10 }
  0x1d   : > { %p578_p1 = pnand %p577_p0, %p571_p7 }
  0x1f   : > { %581 = shalt.err (!%p578_p1)
}
  0x20   : > { %s582_s22 = scalar_lea.vmem %s761_s6, 128  ;;  %s665_s26 = smov [#allocation2]  }
  0x21   : > { %p583_p2 = scmp.ne.s32.totalorder %s761_s6, %s582_s22  ;;  %s587_s27 = sshll.u32 %s665_s26, 4  ;;  %s588_s27 = int_to_ptr.vmem [resolvable:$false] %s587_s27 }
  0x22   : > { %s589_s28 = scalar_lea.vmem %s588_s27, 256  ;;  %p590_p11 = scmp.lt.s32.totalorder %s761_s6, %s588_s27 }
  0x23   : > { %p585_p4 = pnand %p583_p2, %p569_p3  ;;  %p591_p5 = scmp.lt.s32.totalorder %s589_s28, %s582_s22 }
  0x25   : > { %p586_p12 = pneg %p585_p4  ;;  %p592_p8 = por %p591_p5, %p590_p11 }
  0x27   : > { %p593_p9 = pnand %p592_p8, %p586_p12 }
  0x29   : > { %596 = shalt.err (!%p593_p9)
}
  0x2a   : > { %518 = dma.hbm_to_vmem [thread:$0]  (!%p757_p13), %s753_s4, 128, %s761_s6, %s138_s8  }
  0x2b   : > { %p871_p0 = scmp.lt.s32.totalorder %s663_s15, 3  ;;  %p872_p1 = scmp.ge.s32.totalorder %s663_s15, 1 }
  0x2d   : > { %p155_p3 = pnand %p872_p1, %p871_p0 }
  0x2e   : > { %s795_s29 = sand.u32 (!%p155_p3), 1, %s655_s13  }
  0x2f   : > { %158 = sbr.rel (%p155_p3) target bundleno = 808 (0x328), region = 32  ;;  %s482_s30 = sshll.u32 (!%p155_p3), %s795_s29, 3 }
  0x30   : > { %s161_s5 = scalar_lea.sflag (!%p155_p3), [#allocation3], %s795_s29  ;;  %s164_s7 = scalar_lea.vmem (!%p155_p3), [#allocation2], %s482_s30 }
  0x36   : > { %642 = dma.done.wait (%p733_p6), %s161_s5, 128  }
  0x37   : > { %644 = vsyncadd (%p733_p6), %s161_s5, 4294967168  ;;  %vm191_vm0 = vcmask 1043456   ;;  %v187_v0 = vld [vmem:[%s164_s7] sm:$0xff]  ;;  %v666_v5 = vmov 0.0   ;;  %vm667_vm1 = vmmov 0   ;;  %v201_v7 = vlaneseq  ;;  %s496_s9 = sshll.u32 %s711_s16, 7 }
  0x38   : > { %v189_v1 = vcombine.high %v187_v0, %v187_v0  ;;  %v192_v2 = vsel %vm191_vm0, %v187_v0, 0.0  ;;  %501 = vmatprep.subr.mxu0 %v666_v5  ;;  %v198_v6 = vld [vmem:[%s862_s1] sm:$0xf]  ;;  %506 = vmatprep.subr.mxu1 %v666_v5  ;;  %vm207_vm2 = vcmask 31744   ;;  %vm292_vm3 = vcmask 1041408   ;;  %s186_s10 = scalar_lea.vmem [#allocation5], %s482_s30  ;;  %s817_s20 = scalar_lea.hbm %s864_s3, %s496_s9 }
  0x39   : > { %502 = vmatpush3.msk.msra.mxu0 %vm191_vm0, %v198_v6  ;;  %503 = vmatprep.mubr.msk.f32.mxu0 %vm667_vm1, %v666_v5  ;;  %v202_v8 = vand.u32 127, %v201_v7  ;;  %v204_v9 = vshrl.u32 %v201_v7, 7  ;;  %v199_v14 = vld [vmem:[%s863_s2] sm:$0x3]  ;;  %vm288_vm4 = vcmask 15360   ;;  %s405_s11 = sshll.u32 %s186_s10, 4  ;;  %s819_s11 = int_to_ptr.vmem [resolvable:$true] %s405_s11 }
  0x3a   : > { %v193_v3 = vsel %vm191_vm0, %v189_v1, 0.0  ;;  %508 = vmatprep.mubr.msk.f32.mxu1 %vm667_vm1, %v666_v5  ;;  %507 = vmatpush3.msk.msra.mxu1 %vm292_vm3, %v199_v14  ;;  %v668_v29 = vmov 839922192   ;;  %s391_s22 = scalar_lea.sflag [#allocation4], %s795_s29  ;;  %s597_s26 = scalar_lea.vmem %s819_s11, 128 }
  0x3b   : > { %v194_v4 = vadd.f32 %v193_v3, %v192_v2  ;;  %v205_v10 = vsub.s32 %v202_v8, %v204_v9  ;;  %v374_v26 = vsub.s32 0, %v204_v9  ;;  %v381_v30 = vunpack.c.l.s4 %v668_v29  ;;  %p598_p6 = scmp.ne.s32.totalorder %s819_s11, %s597_s26  ;;  %p873_p11 = scmp.ne.s32.totalorder %s868_s24, 0 }
  0x3c   : > { %s669_s16 = smov [#allocation5]  }
  0x3d   : > { %195 = vadd.xlane.f32.xlu0 %v194_v4  ;;  %v382_v31 = vunpack.c.0.s8 %v381_v30  ;;  %p599_p12 = pnand %p598_p6, %p873_p11  ;;  %s601_s27 = sshll.u32 %s669_s16, 4  ;;  %s602_s27 = int_to_ptr.vmem [resolvable:$false] %s601_s27 }
  0x3e   : > { %s603_s28 = scalar_lea.vmem %s602_s27, 256  ;;  %p604_p7 = scmp.lt.s32.totalorder %s819_s11, %s602_s27 }
  0x3f   : > { %v385_v32 = vsub.s32 %v382_v31, %v204_v9  ;;  %p600_p13 = pneg %p599_p12  ;;  %p605_p10 = scmp.lt.s32.totalorder %s603_s28, %s597_s26 }
  0x41   : > { %p606_p2 = por %p605_p10, %p604_p7 }
  0x43   : > { %p607_p4 = pnand %p606_p2, %p600_p13 }
  0xca   : > { %v196_v11 = vpop.xlane.xlu0 %195 }
  0xcb   : > { %v197_v12 = vmul.f32 0.00390625, %v196_v11 }
  0xcd   : > { %v206_v13 = vrot.slane %v197_v12, %v205_v10 }
  0xcf   : > { %504 = vmatmul.mubr.msk.f32.vlgmr.msra.gmra.mrb[0].mxu0 %vm207_vm2, %v206_v13 }
 0x1a2   : > { %v279_v15 = vpop.f32.mrb[0].mxu0 }
 0x1a3   : > { %v284_v16 = vmul.f32 1.442695, %v279_v15  ;;  %v505_v17 = vpop.f32.mrb[1].mxu0  ;;  %vm283_vm5 = vcmp.gt.f32.partialorder %v279_v15, 0.0 }
 0x1a5   : > { %561 = vpow2.f32 %v284_v16 }
 0x1af   : > { %v562_v18 = vpop.eup %561 }
 0x1b0   : > { %v486_v19 = vadd.f32 -1.0, %v562_v18 }
 0x1b2   : > { %v287_v20 = vsel %vm283_vm5, %v279_v15, %v486_v19 }
 0x1b3   : > { %509 = vmatmul.mubr.msk.f32.vlgmr.msra.gmra.mrb[0].mxu1 %vm288_vm4, %v287_v20 }
 0x286   : > { %v362_v21 = vpop.f32.mrb[0].mxu1 }
 0x287   : > { %v489_v22 = vmul.f32 -1.442695, %v362_v21  ;;  %v510_v23 = vpop.f32.mrb[1].mxu1 }
 0x289   : > { %563 = vpow2.f32 %v489_v22 }
 0x293   : > { %v564_v24 = vpop.eup %563 }
 0x294   : > { %v369_v25 = vadd.f32 1.0, %v564_v24 }
 0x296   : > { %565 = vrcp.f32 %v369_v25 }
 0x2a0   : > { %v566_v27 = vpop.eup %565 }
 0x2a1   : > { %v375_v28 = vrot.slane %v566_v27, %v374_v26 }
 0x2a3   : > { %377 = vbcast.lane.b32.xlu0 %v375_v28, 256 }
 0x315   : > { %v378_v33 = vpop.permute.xlu0 %377 }
 0x316   : > { %v386_v34 = vrot.slane %v378_v33, %v385_v32 }
 0x318   : > { %v388_v35 = vmul.f32 %v386_v34, %v187_v0 }
 0x31a   : > { %389 = vst [vmem:[%s186_s10] sm:$0xff] %v388_v35 }
 0x31b   : > { %610 = shalt.err (!%p607_p4)
}
 0x31c   : > { %s611_s29 = scalar_lea.hbm %s817_s20, 128  ;;  %s615_s7 = scalar_lea.hbm %s864_s3, 256 }
 0x31d   : > { %p612_p5 = scmp.ne.s32.totalorder %s817_s20, %s611_s29  ;;  %p616_p0 = scmp.lt.u32.totalorder %s817_s20, %s864_s3 }
 0x31e   : > { %p617_p1 = scmp.lt.u32.totalorder %s615_s7, %s611_s29  ;;  %p619_p6 = scmp.lt.u32.totalorder %s611_s29, %s817_s20 }
 0x31f   : > { %p613_p8 = pnand %p612_p5, %p873_p11 }
 0x320   : > { %p618_p3 = por %p617_p1, %p616_p0 }
 0x321   : > { %p614_p9 = pneg %p613_p8 }
 0x322   : > { %p620_p12 = por %p619_p6, %p618_p3 }
 0x324   : > { %p621_p13 = pnand %p620_p12, %p614_p9 }
 0x326   : > { %624 = shalt.err (!%p621_p13)
}
 0x327   : > { %513 = dma.vmem_to_hbm [thread:$0]  (%p873_p11), %s819_s11, 128, %s817_s20, %s391_s22  }
 0x328 PF: > { %s417_s23 = sand.u32 1, %s651_s12   ;;  %p874_p7 = scmp.ne.s32.totalorder %s869_s25, 0 }
 0x329   : > { %p875_p10 = scmp.ge.s32.totalorder %s663_s15, 2  ;;  %s418_s8 = scalar_lea.sflag [#allocation4], %s417_s23 }
 0x32b   : > { %p520_p2 = pnand %p875_p10, %p874_p7 }
 0x32d   : > { %646 = dma.done.wait (!%p520_p2), %s418_s8, 128  }
 0x32e   : > { %648 = vsyncadd (!%p520_p2), %s418_s8, 4294967168  ;;  %p16_p4 = scmp.ge.s32.totalorder %s715_s18, 4   ;;  %s876_s12 = smov %s655_s13 }
 0x32f   : > { %s877_s13 = smov %s659_s14  ;;  %s878_s14 = smov %s727_s21 }
 0x330   : > { %s879_s15 = smov %s715_s18  ;;  %18 = sbr.rel (!%p16_p4) target bundleno = 5 (0x5), region = 77 }
 0x337   :  { %423 = vsyncpa [#allocation3], 1 }
 0x338   :  { %425 = vsyncpa [#allocation3 + $0x1], 1 }
 0x339   :  { %426 = vsyncpa [#allocation4], 1 }
 0x33a   :  { %428 = vsyncpa [#allocation4 + $0x1], 1 }

</bundles_post_ra>
